<compile_context>
chip_gen: v6e
topology: v6e:2x2x1
jax: 0.10.0
libtpu: 0.0.40
codegen_flags: <defaults>
</compile_context>

<pallas_src>
import functools

import jax
import jax.numpy as jnp
from jax.experimental import pallas as pl
from jax.experimental.pallas import tpu as pltpu


def _round_up(a: int, b: int) -> int:
    return (a + b - 1) // b * b


def schema_encoder_kernel(x_ref, cid_ref, comb_ref, w1h_ref, b1_ref,
                          w2_ref, b2_ref, out_ref):
    mm_dtype = w1h_ref.dtype          # bf16 (default) or f32; accumulation is f32
    tm = x_ref.shape[0]
    n_comb = comb_ref.shape[0]

    # In-kernel gather of the pre-projected (pk+fk+ft) layer-1 contribution:
    # one-hot [tm, n_comb] @ [n_comb, H] on the MXU.  Masked rows carry the
    # sentinel id == n_comb, match no column, and contribute exactly zero
    # (reproduces the field_masks multiply; masks are binary 0/1).
    cols = jax.lax.broadcasted_iota(jnp.int32, (tm, n_comb), 1)
    onehot = (cid_ref[...] == cols).astype(mm_dtype)

    # Layer 1: x @ W1_h + gathered embedding term + b1, then ReLU.
    h = jnp.dot(x_ref[...].astype(mm_dtype), w1h_ref[...],
                preferred_element_type=jnp.float32)
    h = h + jnp.dot(onehot, comb_ref[...], preferred_element_type=jnp.float32)
    h = jnp.maximum(h + b1_ref[...], 0.0)

    # Layer 2.
    out_ref[...] = (jnp.dot(h.astype(mm_dtype), w2_ref[...],
                            preferred_element_type=jnp.float32)
                    + b2_ref[...]).astype(out_ref.dtype)


def schema_encoder_forward(input_hiddens, feature_ids, params, *,
                           block_m: int = 512,
                           matmul_dtype=jnp.bfloat16,
                           out_dtype=jnp.float32):
    """input_hiddens: [B, S, H]. feature_ids nested like the PyTorch module."""
    B, S, H = input_hiddens.shape
    M = B * S

    pk_ids = feature_ids[0][0].reshape(M).astype(jnp.int32)
    fk_ids = feature_ids[1][0].reshape(M).astype(jnp.int32)
    ft_ids = feature_ids[2][0].reshape(M).astype(jnp.int32)
    table_masks = feature_ids[3][0].reshape(M).astype(jnp.int32)

    n_pk = params["pk_table"].shape[0]
    n_fk = params["fk_table"].shape[0]
    n_ft = params["ft_table"].shape[0]
    n_comb = n_pk * n_fk * n_ft

    # Pre-project the tiny embedding tables through their W1 blocks once and
    # enumerate every (pk, fk, ft) combination into one small resident table.
    pk_proj = params["pk_table"] @ params["w1_pk"]           # [n_pk, H]
    fk_proj = params["fk_table"] @ params["w1_fk"]           # [n_fk, H]
    ft_proj = params["ft_table"] @ params["w1_ft"]           # [n_ft, H]
    comb_table = (pk_proj[:, None, None, :] + fk_proj[None, :, None, :]
                  + ft_proj[None, None, :, :]).reshape(n_comb, H)
    comb_table = comb_table.astype(matmul_dtype)

    comb_ids = pk_ids * (n_fk * n_ft) + fk_ids * n_ft + ft_ids
    # table_masks == 1  =>  field_mask == 0  =>  sentinel id -> zero contribution.
    comb_ids = jnp.where(table_masks == 1, n_comb, comb_ids).reshape(M, 1)

    # In production the activations should already arrive in bf16 (no-op cast);
    # otherwise this halves the kernel's dominant HBM read stream.
    x = input_hiddens.reshape(M, H).astype(matmul_dtype)

    w1h = params["w1_h"].astype(matmul_dtype)
    w2 = params["w2"].astype(matmul_dtype)
    b1 = params["b1"].reshape(1, H).astype(jnp.float32)
    b2 = params["b2"].reshape(1, H).astype(jnp.float32)

    # --- row tiling over M ---------------------------------------------------
    tm = min(block_m, _round_up(M, 8))
    # Keep >= 4 grid steps when M allows it: >= 2 pipelined tiles per TC.
    tm = min(tm, max(8, _round_up(pl.cdiv(M, 4), 8)))
    tm = max(8, (tm // 8) * 8)                      # (8,128) sublane constraint

    mm_bytes = jnp.dtype(matmul_dtype).itemsize
    ob_bytes = jnp.dtype(out_dtype).itemsize

    def vmem_estimate(tm_):
        streamed = 2 * (tm_ * H * mm_bytes          # x tile (double-buffered)
                        + tm_ * 128 * 4             # comb-id tile (lane padded)
                        + tm_ * H * ob_bytes)       # out tile
        weights = 2 * 2 * H * H * mm_bytes          # w1_h + w2, 2 buffers each
        small = 2 * (n_comb * H * mm_bytes + 2 * H * 4)
        return streamed + weights + small

    vmem_cap = 64 << 20                             # v7x physical; safe fallback
    try:
        vmem_cap = int(pltpu.get_tpu_info().vmem_capacity_bytes)
    except Exception:
        pass
    budget = int(vmem_cap * 0.8)
    while tm > 8 and vmem_estimate(tm) > budget:
        tm = max(8, (tm // 2 // 8) * 8)
    # TODO(synk): if 2*H*H weights alone exceed the budget (H >~ 4k on v7x), add
    # a K/N "arbitrary" grid axis with an f32 VMEM accumulator instead of
    # shrinking tm further.
    vmem_limit = int(min(budget, max(32 << 20, vmem_estimate(tm) + (4 << 20))))

    grid = (pl.cdiv(M, tm),)                        # ragged last block handled

    def row_spec(shape):
        return pl.BlockSpec(shape, lambda i: (i, 0))

    def inv_spec(shape):
        return pl.BlockSpec(shape, lambda i: (0, 0))

    out = pl.pallas_call(
        schema_encoder_kernel,
        out_shape=jax.ShapeDtypeStruct((M, H), out_dtype),
        grid=grid,
        in_specs=[
            row_spec((tm, H)),            # x (bf16 stream)
            row_spec((tm, 1)),            # combined int32 ids (sentinel == masked)
            inv_spec((n_comb, H)),        # combined pre-projected table (resident)
            inv_spec((H, H)),             # W1 hidden block (resident)
            inv_spec((1, H)),             # b1
            inv_spec((H, H)),             # W2 (resident)
            inv_spec((1, H)),             # b2
        ],
        out_specs=row_spec((tm, H)),
        compiler_params=pltpu.CompilerParams(
            dimension_semantics=("parallel",),
            vmem_limit_bytes=vmem_limit,
        ),
    )(x, comb_ids, comb_table, w1h, b1, w2, b2)

    # TODO(synk): if production H < 128, fold rows into a lane-dense [M/k, k*H]
    # slab (avoids masked vst partial stores and MXU lane padding).
    return out.reshape(B, S, H)


def reference_forward(input_hiddens, feature_ids, params):
    """Pure-JAX reference mirroring the PyTorch forward (eval mode)."""
    pk_ids = feature_ids[0][0]
    fk_ids = feature_ids[1][0]
    ft_ids = feature_ids[2][0]
    table_masks = feature_ids[3][0]
    field_masks = (1 - table_masks).astype(jnp.float32)[..., None]
    pk = params["pk_table"][pk_ids] * field_masks
    fk = params["fk_table"][fk_ids] * field_masks
    ft = params["ft_table"][ft_ids] * field_masks
    cat = jnp.concatenate([input_hiddens, pk, fk, ft], axis=2)
    w1 = jnp.concatenate(
        [params["w1_h"], params["w1_pk"], params["w1_fk"], params["w1_ft"]], axis=0)
    h = jnp.maximum(cat @ w1 + params["b1"], 0.0)
    return h @ params["w2"] + params["b2"]


def init_params(key, hidden_dim, feat_dim, num_field_types):
    ks = jax.random.split(key, 7)
    scale = 0.1
    return {
        "pk_table": scale * jax.random.normal(ks[0], (2, feat_dim), jnp.float32),
        "fk_table": scale * jax.random.normal(ks[1], (2, feat_dim), jnp.float32),
        "ft_table": scale * jax.random.normal(ks[2], (num_field_types, feat_dim), jnp.float32),
        # Feedforward(hidden+3*feat -> hidden -> hidden), W1 stored split by input block
        "w1_h":  scale * jax.random.normal(ks[3], (hidden_dim, hidden_dim), jnp.float32),
        "w1_pk": scale * jax.random.normal(ks[4], (feat_dim, hidden_dim), jnp.float32),
        "w1_fk": scale * jax.random.normal(ks[5], (feat_dim, hidden_dim), jnp.float32),
        "w1_ft": scale * jax.random.normal(ks[6], (feat_dim, hidden_dim), jnp.float32),
        "b1": jnp.zeros((1, hidden_dim), jnp.float32) + 0.01,
        "w2": scale * jax.random.normal(jax.random.fold_in(key, 100),
                                        (hidden_dim, hidden_dim), jnp.float32),
        "b2": jnp.zeros((1, hidden_dim), jnp.float32) + 0.02,
    }
    # TODO(synk): field_table_fusion_layer (FusionLayer) is constructed in __init__
    # but never used in forward(), so it is intentionally not implemented.


if __name__ == "__main__":
    B, S, H, F = 2, 8, 32, 16
    NUM_FIELD_TYPES = 6

    key = jax.random.PRNGKey(0)
    k_x, k_pk, k_fk, k_ft, k_mask, k_p = jax.random.split(key, 6)

    input_hiddens = jax.random.normal(k_x, (B, S, H), jnp.float32)
    pk_ids = jax.random.randint(k_pk, (B, S), 0, 2)
    fk_ids = jax.random.randint(k_fk, (B, S), 0, 2)
    ft_ids = jax.random.randint(k_ft, (B, S), 0, NUM_FIELD_TYPES)
    table_masks = jax.random.randint(k_mask, (B, S), 0, 2)

    # feature_ids mirrors the PyTorch structure:
    # [(pk_ids, _), (fk_ids, _), (ft_ids, _), (table_masks, _)]
    feature_ids = [(pk_ids, None), (fk_ids, None), (ft_ids, None), (table_masks, None)]

    params = init_params(k_p, H, F, NUM_FIELD_TYPES)
    ref = reference_forward(input_hiddens, feature_ids, params)

    # f32-operand path: validates the exact one-hot / pre-projection factoring.
    fwd_f32 = jax.jit(functools.partial(
        schema_encoder_forward, block_m=8, matmul_dtype=jnp.float32))
    out_f32 = jax.block_until_ready(fwd_f32(input_hiddens, feature_ids, params))
    assert out_f32.shape == (B, S, H)
    assert jnp.allclose(out_f32, ref, atol=1e-4, rtol=1e-4)

    # Default bf16-operand path (MXU-native on all generations), f32 accumulation.
    fwd_bf16 = jax.jit(functools.partial(schema_encoder_forward, block_m=512))
    out_bf16 = jax.block_until_ready(fwd_bf16(input_hiddens, feature_ids, params))
    assert out_bf16.shape == (B, S, H)
    assert jnp.allclose(out_bf16, ref, atol=1e-1, rtol=1e-1)

    # Ragged-M path (M=14, tm=8): exercises the cdiv grid / masked last block
    # that replaced the jnp.pad + out[:M] HBM copies.
    S2 = 7
    ih2 = input_hiddens[:, :S2]
    fids2 = [(pk_ids[:, :S2], None), (fk_ids[:, :S2], None),
             (ft_ids[:, :S2], None), (table_masks[:, :S2], None)]
    ref2 = reference_forward(ih2, fids2, params)
    fwd_rag = jax.jit(functools.partial(
        schema_encoder_forward, block_m=8, matmul_dtype=jnp.float32))
    out2 = jax.block_until_ready(fwd_rag(ih2, fids2, params))
    assert out2.shape == (B, S2, H)
    assert jnp.allclose(out2, ref2, atol=1e-4, rtol=1e-4)

    print("KERNEL_OK")
</pallas_src>

<mosaic_0001>
module attributes {stable_mosaic.version = 11 : i64} {
  func.func @schema_encoder_kernel(%arg0: i32, %arg1: memref<8x32xf32, #tpu.memory_space<vmem>>, %arg2: memref<8x1xi32, #tpu.memory_space<vmem>>, %arg3: memref<24x32xf32, #tpu.memory_space<vmem>>, %arg4: memref<32x32xf32, #tpu.memory_space<vmem>>, %arg5: memref<1x32xf32, #tpu.memory_space<vmem>>, %arg6: memref<32x32xf32, #tpu.memory_space<vmem>>, %arg7: memref<1x32xf32, #tpu.memory_space<vmem>>, %arg8: memref<8x32xf32, #tpu.memory_space<vmem>>) attributes {dimension_semantics = [#tpu.dimension_semantics<parallel>], iteration_bounds = array<i64: 2>, scalar_prefetch = 0 : i64, scratch_operands = 0 : i64, tpu.core_type = #tpu.core_type<tc>, window_params = [{transform_indices = @transform_0, window_bounds = array<i64: 8, 32>}, {transform_indices = @transform_1, window_bounds = array<i64: 8, 1>}, {pipeline_mode = #tpu.pipeline_mode<synchronous>, transform_indices = @transform_2, window_bounds = array<i64: 24, 32>}, {pipeline_mode = #tpu.pipeline_mode<synchronous>, transform_indices = @transform_3, window_bounds = array<i64: 32, 32>}, {pipeline_mode = #tpu.pipeline_mode<synchronous>, transform_indices = @transform_4, window_bounds = array<i64: 1, 32>}, {pipeline_mode = #tpu.pipeline_mode<synchronous>, transform_indices = @transform_5, window_bounds = array<i64: 32, 32>}, {pipeline_mode = #tpu.pipeline_mode<synchronous>, transform_indices = @transform_6, window_bounds = array<i64: 1, 32>}, {transform_indices = @transform_7, window_bounds = array<i64: 8, 32>}]} {
    %0 = tpu.iota {dimensions = array<i32: 1>} : vector<8x24xi32>
    %c0 = arith.constant 0 : index
    %c0_0 = arith.constant 0 : index
    %1 = vector.load %arg2[%c0, %c0_0] : memref<8x1xi32, #tpu.memory_space<vmem>>, vector<8x1xi32>
    %2 = vector.broadcast %1 : vector<8x1xi32> to vector<8x24xi32>
    %3 = arith.cmpi eq, %2, %0 : vector<8x24xi32>
    %4 = arith.extui %3 : vector<8x24xi1> to vector<8x24xi32>
    %5 = arith.sitofp %4 : vector<8x24xi32> to vector<8x24xf32>
    %c0_1 = arith.constant 0 : index
    %c0_2 = arith.constant 0 : index
    %6 = vector.load %arg1[%c0_1, %c0_2] : memref<8x32xf32, #tpu.memory_space<vmem>>, vector<8x32xf32>
    %c0_3 = arith.constant 0 : index
    %c0_4 = arith.constant 0 : index
    %7 = vector.load %arg4[%c0_3, %c0_4] : memref<32x32xf32, #tpu.memory_space<vmem>>, vector<32x32xf32>
    %cst = arith.constant dense<0.000000e+00> : vector<8x32xf32>
    %8 = tpu.matmul %6, %7, %cst {dimension_numbers = #tpu.dot_dimension_numbers<[1], [0], [0], [1], [0, 0, 1, 1], [], []>} : vector<8x32xf32>, vector<32x32xf32>, vector<8x32xf32> -> vector<8x32xf32>
    %c0_5 = arith.constant 0 : index
    %c0_6 = arith.constant 0 : index
    %9 = vector.load %arg3[%c0_5, %c0_6] : memref<24x32xf32, #tpu.memory_space<vmem>>, vector<24x32xf32>
    %cst_7 = arith.constant dense<0.000000e+00> : vector<8x32xf32>
    %10 = tpu.matmul %5, %9, %cst_7 {dimension_numbers = #tpu.dot_dimension_numbers<[1], [0], [0], [1], [0, 0, 1, 1], [], []>} : vector<8x24xf32>, vector<24x32xf32>, vector<8x32xf32> -> vector<8x32xf32>
    %11 = arith.addf %8, %10 : vector<8x32xf32>
    %c0_8 = arith.constant 0 : index
    %c0_9 = arith.constant 0 : index
    %12 = vector.load %arg5[%c0_8, %c0_9] : memref<1x32xf32, #tpu.memory_space<vmem>>, vector<1x32xf32>
    %13 = vector.broadcast %12 : vector<1x32xf32> to vector<8x32xf32>
    %14 = arith.addf %11, %13 : vector<8x32xf32>
    %cst_10 = arith.constant 0.000000e+00 : f32
    %15 = vector.broadcast %cst_10 : f32 to vector<8x32xf32>
    %16 = arith.maximumf %14, %15 : vector<8x32xf32>
    %c0_11 = arith.constant 0 : index
    %c0_12 = arith.constant 0 : index
    %17 = vector.load %arg6[%c0_11, %c0_12] : memref<32x32xf32, #tpu.memory_space<vmem>>, vector<32x32xf32>
    %cst_13 = arith.constant dense<0.000000e+00> : vector<8x32xf32>
    %18 = tpu.matmul %16, %17, %cst_13 {dimension_numbers = #tpu.dot_dimension_numbers<[1], [0], [0], [1], [0, 0, 1, 1], [], []>} : vector<8x32xf32>, vector<32x32xf32>, vector<8x32xf32> -> vector<8x32xf32>
    %c0_14 = arith.constant 0 : index
    %c0_15 = arith.constant 0 : index
    %19 = vector.load %arg7[%c0_14, %c0_15] : memref<1x32xf32, #tpu.memory_space<vmem>>, vector<1x32xf32>
    %20 = vector.broadcast %19 : vector<1x32xf32> to vector<8x32xf32>
    %21 = arith.addf %18, %20 : vector<8x32xf32>
    %c0_16 = arith.constant 0 : index
    %c0_17 = arith.constant 0 : index
    %22 = vector.load %arg8[%c0_16, %c0_17] : memref<8x32xf32, #tpu.memory_space<vmem>>, vector<8x32xf32>
    tpu.vector_store %arg8[%c0_16, %c0_17], %21 {strides = array<i32>} : memref<8x32xf32, #tpu.memory_space<vmem>>, vector<8x32xf32>,
    return
  }
  func.func @transform_0(%arg0: i32) -> (i32, i32) {
    %c0_i32 = arith.constant 0 : i32
    %c0_i32_0 = arith.constant 0 : i32
    return %arg0, %c0_i32 : i32, i32
  }
  func.func @transform_1(%arg0: i32) -> (i32, i32) {
    %c0_i32 = arith.constant 0 : i32
    %c0_i32_0 = arith.constant 0 : i32
    return %arg0, %c0_i32 : i32, i32
  }
  func.func @transform_2(%arg0: i32) -> (i32, i32) {
    %c0_i32 = arith.constant 0 : i32
    %c0_i32_0 = arith.constant 0 : i32
    %c0_i32_1 = arith.constant 0 : i32
    return %c0_i32, %c0_i32_0 : i32, i32
  }
  func.func @transform_3(%arg0: i32) -> (i32, i32) {
    %c0_i32 = arith.constant 0 : i32
    %c0_i32_0 = arith.constant 0 : i32
    %c0_i32_1 = arith.constant 0 : i32
    return %c0_i32, %c0_i32_0 : i32, i32
  }
  func.func @transform_4(%arg0: i32) -> (i32, i32) {
    %c0_i32 = arith.constant 0 : i32
    %c0_i32_0 = arith.constant 0 : i32
    %c0_i32_1 = arith.constant 0 : i32
    return %c0_i32, %c0_i32_0 : i32, i32
  }
  func.func @transform_5(%arg0: i32) -> (i32, i32) {
    %c0_i32 = arith.constant 0 : i32
    %c0_i32_0 = arith.constant 0 : i32
    %c0_i32_1 = arith.constant 0 : i32
    return %c0_i32, %c0_i32_0 : i32, i32
  }
  func.func @transform_6(%arg0: i32) -> (i32, i32) {
    %c0_i32 = arith.constant 0 : i32
    %c0_i32_0 = arith.constant 0 : i32
    %c0_i32_1 = arith.constant 0 : i32
    return %c0_i32, %c0_i32_0 : i32, i32
  }
  func.func @transform_7(%arg0: i32) -> (i32, i32) {
    %c0_i32 = arith.constant 0 : i32
    %c0_i32_0 = arith.constant 0 : i32
    return %arg0, %c0_i32 : i32, i32
  }
}

</mosaic_0001>

<bundles_post_ra>
// kernel: schema_encoder_forward.1
= control target key start
LH: loop header
LB: loop body
LE: loop exit
PB: predicated region body
PF: predicated region fallthrough
CT: control target
= control target key end

     0   :  { %12 = vsyncpa [#allocation3], 0  ;;  %s987_s0 = inlined_call_operand.vmem [shape: f32[16,32], index: 0, kind: input, shape index: {}]   ;;  %s988_s1 = inlined_call_operand.vmem [shape: s32[16,1], index: 1, kind: input, shape index: {}]   ;;  %s989_s2 = inlined_call_operand.vmem [shape: f32[24,32], index: 2, kind: input, shape index: {}]   ;;  %s990_s3 = inlined_call_operand.vmem [shape: f32[32,32], index: 3, kind: input, shape index: {}]   ;;  %s991_s4 = inlined_call_operand.vmem [shape: f32[1,32], index: 4, kind: input, shape index: {}]   ;;  %s992_s5 = inlined_call_operand.vmem [shape: f32[32,32], index: 5, kind: input, shape index: {}]   ;;  %s993_s6 = inlined_call_operand.vmem [shape: f32[1,32], index: 6, kind: input, shape index: {}]   ;;  %s994_s7 = inlined_call_operand.hbm [shape: f32[16,32], index: 7, kind: output, shape index: {}]  }
   0x1   :  { %14 = vsyncpa [#allocation3 + $0x1], 0  ;;  %s846_s24 = smov 0   ;;  %s848_s25 = smov 0  }
   0x2   :  { %s850_s26 = smov 0   ;;  %s852_s27 = smov 0  }
   0x3 LB: > { %s867_s28 = sadd.s32 4294967295, %s800_s27   ;;  %s635_s29 = sadd.s32 4294967294, %s800_s27   ;;  %s800_s27 = sphi %s852_s27, %s1000_s27   ;;  %s796_s26 = sphi %s850_s26, %s999_s26   ;;  %s792_s25 = sphi %s848_s25, %s998_s25   ;;  %s788_s24 = sphi %s846_s24, %s997_s24  }
   0x4   : > { %s871_s30 = sadd.s32 1, %s800_s27   ;;  %s184_s8 = sadd.s32 1, %s796_s26 }
   0x5   : > { %s181_s9 = ssub.s32 %s800_s27, %s871_s30  ;;  %p194_p0 = scmp.ne.s32.totalorder %s796_s26, %s792_s25 }
   0x6   : > { %p182_p1 = scmp.eq.s32.totalorder %s181_s9, 0  ;;  %p195_p2 = scmp.eq.s32.totalorder %s867_s28, 1 }
   0x7   : > { %p200_p3 = scmp.ne.s32.totalorder %s792_s25, %s788_s24  ;;  %p201_p4 = scmp.eq.s32.totalorder %s635_s29, 1 }
   0x8   : > { %s882_s10 = scalar_select %p182_p1, %s796_s26, %s184_s8  }
   0x9   : > { %p884_p5 = por %p195_p2, %p194_p0  ;;  %p888_p6 = por %p201_p4, %p200_p3 }
   0xa   : > { %p638_p7 = scmp.ge.s32.totalorder %s800_s27, 1  ;;  %p248_p8 = scmp.lt.s32.totalorder %s800_s27, 3 }
   0xc   : > { %p249_p9 = pnand %p638_p7, %p248_p8 }
   0xd   : > { %p283_p10 = scmp.lt.s32.totalorder (!%p249_p9), %s867_s28, 1  ;;  %s280_s17 = sand.u32 (!%p249_p9), 1, %s792_s25  }
   0xe   : > { %252 = sbr.rel (%p249_p9) target bundleno = 559 (0x22f), region = 48  ;;  %s639_s18 = sshll.u32 (!%p249_p9), %s280_s17, 3 }
   0xf   : > { %s649_s21 = sshll.u32 (!%p249_p9), %s867_s28, 7  ;;  %s282_s22 = scalar_lea.vmem (!%p249_p9), [#allocation2], %s639_s18 }
  0x10   : > { %s564_s23 = sshll.u32 (!%p249_p9), %s282_s22, 4  ;;  %s951_s9 = scalar_lea.hbm (!%p249_p9), %s994_s7, %s649_s21  ;;  %s565_s23 = int_to_ptr.vmem [resolvable:$true] %s564_s23 }
  0x11   : > { %s740_s14 = scalar_lea.vmem (!%p249_p9), %s565_s23, 128 }
  0x12   : > { %p741_p11 = scmp.ne.s32.totalorder (!%p249_p9), %s565_s23, %s740_s14 }
  0x13   : > { %v304_v0 = vld [vmem:[%s990_s3 + $0x18] sm:$0xff]  ;;  %v307_v1 = vld [vmem:[%s989_s2 + $0x10] sm:$0xff]  ;;  %v802_v2 = vmov 0   ;;  %v803_v3 = vmov 0.0   ;;  %s284_s19 = scalar_select %p283_p10, %s867_s28, 1  ;;  %v306_v5 = vld [vmem:[%s989_s2 + $0x8] sm:$0xff]  ;;  %v291_v11 = vlaneseq }
  0x14   : > { %739 = vset.pattern.permute.xlu0 %v802_v2  ;;  %675 = vmatprep.subr.mxu1 %v803_v3  ;;  %v303_v4 = vld [vmem:[%s990_s3 + $0x10] sm:$0xff]  ;;  %v302_v6 = vld [vmem:[%s990_s3 + $0x8] sm:$0xff]  ;;  %v301_v7 = vld [vmem:[%s990_s3] sm:$0xff]  ;;  %vm804_vm0 = vmmov 0   ;;  %vm382_vm1 = vcmask 261120   ;;  %vm308_vm2 = vcmask 195584   ;;  %p742_p12 = pnand %p741_p11, %p884_p5 }
  0x15   : > { %676 = vmatpush3.msra.mxu1 %v304_v0  ;;  %666 = vmatprep.subr.mxu0 %v803_v3  ;;  %s640_s29 = sshll.u32 %s284_s19, 3  ;;  %v305_v10 = vld [vmem:[%s989_s2] sm:$0xff]  ;;  %v292_v12 = vand.u32 127, %v291_v11  ;;  %v468_v15 = vld [vmem:[%s992_s5 + $0x18] sm:$0xff]  ;;  %v467_v16 = vld [vmem:[%s992_s5 + $0x10] sm:$0xff]  ;;  %s805_s28 = smov [#allocation2]  }
  0x16   : > { %677 = vmatprep.subr.mxu1 %v803_v3  ;;  %667 = vmatpush3.msra.mxu0 %v307_v1  ;;  %s290_s13 = scalar_lea.vmem %s988_s1, %s640_s29  ;;  %s286_s16 = scalar_lea.vmem %s987_s0, %s640_s29  ;;  %v466_v17 = vld [vmem:[%s992_s5 + $0x8] sm:$0xff]  ;;  %v465_v19 = vld [vmem:[%s992_s5] sm:$0xff] }
  0x17   : > { %678 = vmatpush3.msra.mxu1 %v303_v4  ;;  %668 = vmatprep.subr.mxu0 %v803_v3  ;;  %v293_v8 = vld [vmem:[%s290_s13] sm:$0xff]  ;;  %s551_s13 = scalar_lea.sflag [#allocation3], %s280_s17  ;;  %p743_p13 = pneg %p742_p12 }
  0x18   : > { %679 = vmatprep.subr.mxu1 %v803_v3  ;;  %669 = vmatpush3.msra.mxu0 %v306_v5  ;;  %v300_v9 = vld [vmem:[%s286_s16] sm:$0xff]  ;;  %s744_s15 = sshll.u32 %s805_s28, 4  ;;  %s745_s15 = int_to_ptr.vmem [resolvable:$false] %s744_s15 }
  0x19   : > { %680 = vmatpush3.msra.mxu1 %v302_v6  ;;  %683 = vmatprep.mubr.msk.f32.mxu1 %vm804_vm0, %v803_v3  ;;  %v645_v22 = vld [vmem:[%s991_s4] ss:$0 sm:$0xff]  ;;  %s746_s16 = scalar_lea.vmem %s745_s15, 256  ;;  %p747_p0 = scmp.lt.s32.totalorder %s565_s23, %s745_s15 }
  0x1a   : > { %295 = vperm.xlu0 %739, %v293_v8   ;;  %681 = vmatprep.subr.mxu1 %v803_v3  ;;  %v646_v27 = vld [vmem:[%s993_s6] ss:$0 sm:$0xff]  ;;  %p748_p1 = scmp.lt.s32.totalorder %s746_s16, %s740_s14 }
  0x1b   : > { %682 = vmatpush3.msra.mxu1 %v301_v7  ;;  %670 = vmatprep.subr.mxu0 %v803_v3 }
  0x1c   : > { %684 = vmatmul.mubr.msk.f32.vlgmr.msra.gmra.mxu1 %vm382_vm1, %v300_v9  ;;  %671 = vmatpush3.msra.mxu0 %v305_v10  ;;  %p749_p2 = por %p748_p1, %p747_p0 }
  0x1d   : > { %672 = vmatprep.mubr.msk.f32.mxu0 %vm804_vm0, %v803_v3  ;;  %686 = vmatprep.subr.mxu0 %v803_v3 }
  0x1e   : > { %p750_p3 = pnand %p749_p2, %p743_p13 }
  0x95   : > { %v296_v13 = vpop.permute.xlu0 %295 }
  0x96   : > { %vm297_vm3 = vcmp.eq.s32.totalorder %v296_v13, %v292_v12 }
  0x97   : > { %v642_v14 = vsel %vm297_vm3, 1.0, %v803_v3 }
  0x98   : > { %673 = vmatmul.mubr.msk.f32.vlgmr.msra.gmra.mxu0 %vm308_vm2, %v642_v14 }
  0x99   : > { %694 = vmatprep.mubr.msk.f32.mxu0 %vm804_vm0, %v803_v3  ;;  %687 = vmatpush3.msra.mxu0 %v468_v15 }
  0x9a   : > { %688 = vmatprep.subr.mxu0 %v803_v3 }
  0x9b   : > { %689 = vmatpush3.msra.mxu0 %v467_v16 }
  0x9c   : > { %690 = vmatprep.subr.mxu0 %v803_v3 }
  0x9d   : > { %691 = vmatpush3.msra.mxu0 %v466_v17 }
  0x9e   : > { %692 = vmatprep.subr.mxu0 %v803_v3 }
  0x9f   : > { %693 = vmatpush3.msra.mxu0 %v465_v19 }
  0xdc   : > { %v452_v18 = vpop.f32.mrf.mxu1 }
  0xde   : > { %v685_v20 = vpop.f32.mrf.mxu1 }
 0x158   : > { %v378_v21 = vpop.f32.mrf.mxu0 }
 0x159   : > { %v453_v23 = vadd.f32 %v452_v18, %v378_v21 }
 0x15a   : > { %v674_v24 = vpop.f32.mrf.mxu0 }
 0x15b   : > { %v463_v25 = vadd.f32 %v645_v22, %v453_v23 }
 0x15d   : > { %v464_v26 = vmax.f32 %v463_v25, 0.0 }
 0x15f   : > { %695 = vmatmul.mubr.msk.f32.vlgmr.msra.gmra.mxu0 %vm382_vm1, %v464_v26 }
 0x21f   : > { %v545_v28 = vpop.f32.mrf.mxu0 }
 0x220   : > { %v546_v29 = vadd.f32 %v646_v27, %v545_v28 }
 0x221   : > { %v696_v30 = vpop.f32.mrf.mxu0 }
 0x222   : > { %549 = vst.msk [vmem:[%s282_s22] sm:$0xff] %vm382_vm1, %v546_v29 }
 0x223   : > { %753 = shalt.err (!%p750_p3)
}
 0x224   : > { %s754_s18 = scalar_lea.hbm %s951_s9, 128  ;;  %s758_s20 = scalar_lea.hbm %s994_s7, 256 }
 0x225   : > { %p755_p4 = scmp.ne.s32.totalorder %s951_s9, %s754_s18  ;;  %p759_p9 = scmp.lt.s32.totalorder %s951_s9, %s994_s7 }
 0x226   : > { %p760_p10 = scmp.lt.s32.totalorder %s758_s20, %s754_s18 }
 0x227   : > { %p756_p7 = pnand %p755_p4, %p884_p5 }
 0x228   : > { %p761_p11 = por %p760_p10, %p759_p9 }
 0x229   : > { %p757_p8 = pneg %p756_p7 }
 0x22b   : > { %p762_p12 = pnand %p761_p11, %p757_p8 }
 0x22d   : > { %765 = shalt.err (!%p762_p12)
}
 0x22e   : > { %697 = dma.vmem_to_hbm [thread:$0]  (%p884_p5), %s565_s23, 128, %s951_s9, %s551_s13  }
 0x22f PF: > { %p703_p13 = scmp.ge.s32.totalorder %s800_s27, 2  ;;  %s576_s29 = sand.u32 1, %s788_s24  }
 0x230   : > { %s577_s8 = scalar_lea.sflag [#allocation3], %s576_s29 }
 0x231   : > { %p700_p0 = pnand %p703_p13, %p888_p6 }
 0x233   : > { %p701_p1 = pneg %p700_p0 }
 0x235   : > { %783 = dma.done.wait (%p701_p1), %s577_s8, 128  }
 0x236   : > { %785 = vsyncadd (%p701_p1), %s577_s8, 4294967168  ;;  %p17_p2 = scmp.ge.s32.totalorder %s871_s30, 4   ;;  %s997_s24 = smov %s792_s25 }
 0x237   : > { %s998_s25 = smov %s796_s26  ;;  %s999_s26 = smov %s882_s10 }
 0x238   : > { %s1000_s27 = smov %s871_s30  ;;  %19 = sbr.rel (!%p17_p2) target bundleno = 3 (0x3), region = 86 }
 0x23d   :  { %582 = vsyncpa [#allocation3], 1 }
 0x23e   :  { %584 = vsyncpa [#allocation3 + $0x1], 1 }

</bundles_post_ra>
